<compile_context>
chip_gen: v6e
topology: v6e:2x2x1
jax: 0.10.0
libtpu: 0.0.40
codegen_flags: <defaults>
</compile_context>

<pallas_src>
import jax
import jax.numpy as jnp
from jax.experimental import pallas as pl
from jax.experimental.pallas import tpu as pltpu

IN_FEATURES = 3
OUT_FEATURES = 4
LANE = 128            # TPU lane width
TL_MAX = 65536        # max batch lanes per grid step (VMEM-safe on v5e/v6e/v7x)


def linear_t_kernel(x_ref, w_ref, b_ref, o_ref):
    # x_ref: (3, TL) f32  = x^T tile (batch in lanes)
    # w_ref: (4, 3) f32   = PyTorch-layout weight, VMEM-resident across steps
    # b_ref: (4, 1) f32   = bias column, VMEM-resident across steps
    # o_ref: (4, TL) f32  = y^T tile
    x = x_ref[...]
    w = w_ref[...]
    # Unrolled K=3 contraction on the VPU:
    #   y^T[j, i] = sum_k w[j, k] * x^T[k, i] + b[j]
    # (4,1)*(1,TL) broadcasts: the weight/bias lane-broadcasts are O(1) per
    # step; the x-row sublane-broadcasts are a handful of XLU ops per 128
    # batch elements, well under the HBM roofline.
    y = (w[:, 0:1] * x[0:1, :]
         + w[:, 1:2] * x[1:2, :]
         + w[:, 2:3] * x[2:3, :]
         + b_ref[...])
    o_ref[...] = y.astype(o_ref.dtype)


def _round_up(n, m):
    return ((n + m - 1) // m) * m


@jax.jit
def testnet_forward(x, weight, bias):
    """y = x @ W^T + b, matching torch.nn.Linear(3, 4).

    x: (B, 3) f32, weight: (4, 3) f32 (PyTorch layout), bias: (4,) f32.
    Returns (B, 4) f32.
    """
    B = x.shape[0]

    # Batch-in-lanes layout: feed x^T (3, B), produce y^T (4, B).
    x_t = x.T.astype(jnp.float32)
    w = weight.astype(jnp.float32)
    b_col = bias.astype(jnp.float32).reshape(OUT_FEATURES, 1)

    # Lane tile: multiple of 128, large enough to amortize per-step overhead,
    # small enough for the v5e scoped-VMEM default, and yielding >=2 grid
    # steps whenever B > 128 (megacore on v7x).
    lanes = _round_up(B, LANE)
    tl = min(TL_MAX, max(LANE, _round_up(-(-lanes // 2), LANE)))
    num_steps = pl.cdiv(B, tl)

    out_t = pl.pallas_call(
        linear_t_kernel,
        out_shape=jax.ShapeDtypeStruct((OUT_FEATURES, B), jnp.float32),
        grid_spec=pl.GridSpec(
            grid=(num_steps,),
            in_specs=[
                # x^T: tiled over the lane (batch) axis; ragged tail is masked.
                pl.BlockSpec((IN_FEATURES, tl), lambda i: (0, i)),
                # weight / bias: single full-extent blocks, resident all steps.
                pl.BlockSpec((OUT_FEATURES, IN_FEATURES), lambda i: (0, 0)),
                pl.BlockSpec((OUT_FEATURES, 1), lambda i: (0, 0)),
            ],
            out_specs=pl.BlockSpec((OUT_FEATURES, tl), lambda i: (0, i)),
        ),
        compiler_params=pltpu.CompilerParams(
            dimension_semantics=("parallel",)),
    )(x_t, w, b_col)

    # Back to the nn.Linear (B, 4) layout.
    return out_t.T


if __name__ == "__main__":
    key = jax.random.PRNGKey(0)
    kx, kw, kb = jax.random.split(key, 3)

    # Deterministic parameters with nn.Linear(3, 4) shapes.
    weight = jax.random.normal(kw, (OUT_FEATURES, IN_FEATURES),
                               dtype=jnp.float32) * 0.1
    bias = jax.random.normal(kb, (OUT_FEATURES,), dtype=jnp.float32) * 0.1

    # Small batch: single (partial) block.
    x = jax.random.normal(kx, (8, IN_FEATURES), dtype=jnp.float32)
    y = jax.block_until_ready(testnet_forward(x, weight, bias))
    y_ref = x @ weight.T + bias
    assert y.shape == (8, OUT_FEATURES)
    assert jnp.allclose(y, y_ref, atol=1e-5, rtol=1e-5)

    # Ragged batch: 2 grid steps + masked tail block.
    x2 = jax.random.normal(kx, (300, IN_FEATURES), dtype=jnp.float32)
    y2 = jax.block_until_ready(testnet_forward(x2, weight, bias))
    y2_ref = x2 @ weight.T + bias
    assert y2.shape == (300, OUT_FEATURES)
    assert jnp.allclose(y2, y2_ref, atol=1e-5, rtol=1e-5)

    print("KERNEL_OK")
</pallas_src>

<mosaic_0001>
module attributes {stable_mosaic.version = 11 : i64} {
  func.func @linear_t_kernel(%arg0: i32, %arg1: memref<3x128xf32, #tpu.memory_space<vmem>>, %arg2: memref<4x3xf32, #tpu.memory_space<vmem>>, %arg3: memref<4x1xf32, #tpu.memory_space<vmem>>, %arg4: memref<4x128xf32, #tpu.memory_space<vmem>>) attributes {dimension_semantics = [#tpu.dimension_semantics<parallel>], iteration_bounds = array<i64: 1>, scalar_prefetch = 0 : i64, scratch_operands = 0 : i64, tpu.core_type = #tpu.core_type<tc>, window_params = [{transform_indices = @transform_0, window_bounds = array<i64: 3, 128>}, {pipeline_mode = #tpu.pipeline_mode<synchronous>, transform_indices = @transform_1, window_bounds = array<i64: 4, 3>}, {pipeline_mode = #tpu.pipeline_mode<synchronous>, transform_indices = @transform_2, window_bounds = array<i64: 4, 1>}, {transform_indices = @transform_3, window_bounds = array<i64: 4, 128>}]} {
    %c0 = arith.constant 0 : index
    %c0_0 = arith.constant 0 : index
    %0 = vector.load %arg1[%c0, %c0_0] : memref<3x128xf32, #tpu.memory_space<vmem>>, vector<3x128xf32>
    %c0_1 = arith.constant 0 : index
    %c0_2 = arith.constant 0 : index
    %1 = vector.load %arg2[%c0_1, %c0_2] : memref<4x3xf32, #tpu.memory_space<vmem>>, vector<4x3xf32>
    %2 = vector.extract_strided_slice %1 {offsets = [0, 0], sizes = [4, 1], strides = [1, 1]} : vector<4x3xf32> to vector<4x1xf32>
    %3 = vector.extract_strided_slice %0 {offsets = [0, 0], sizes = [1, 128], strides = [1, 1]} : vector<3x128xf32> to vector<1x128xf32>
    %4 = vector.broadcast %2 : vector<4x1xf32> to vector<4x128xf32>
    %5 = vector.broadcast %3 : vector<1x128xf32> to vector<4x128xf32>
    %6 = arith.mulf %4, %5 : vector<4x128xf32>
    %7 = vector.extract_strided_slice %1 {offsets = [0, 1], sizes = [4, 1], strides = [1, 1]} : vector<4x3xf32> to vector<4x1xf32>
    %8 = vector.extract_strided_slice %0 {offsets = [1, 0], sizes = [1, 128], strides = [1, 1]} : vector<3x128xf32> to vector<1x128xf32>
    %9 = vector.broadcast %7 : vector<4x1xf32> to vector<4x128xf32>
    %10 = vector.broadcast %8 : vector<1x128xf32> to vector<4x128xf32>
    %11 = arith.mulf %9, %10 : vector<4x128xf32>
    %12 = arith.addf %6, %11 : vector<4x128xf32>
    %13 = vector.extract_strided_slice %1 {offsets = [0, 2], sizes = [4, 1], strides = [1, 1]} : vector<4x3xf32> to vector<4x1xf32>
    %14 = vector.extract_strided_slice %0 {offsets = [2, 0], sizes = [1, 128], strides = [1, 1]} : vector<3x128xf32> to vector<1x128xf32>
    %15 = vector.broadcast %13 : vector<4x1xf32> to vector<4x128xf32>
    %16 = vector.broadcast %14 : vector<1x128xf32> to vector<4x128xf32>
    %17 = arith.mulf %15, %16 : vector<4x128xf32>
    %18 = arith.addf %12, %17 : vector<4x128xf32>
    %c0_3 = arith.constant 0 : index
    %c0_4 = arith.constant 0 : index
    %19 = vector.load %arg3[%c0_3, %c0_4] : memref<4x1xf32, #tpu.memory_space<vmem>>, vector<4x1xf32>
    %20 = vector.broadcast %19 : vector<4x1xf32> to vector<4x128xf32>
    %21 = arith.addf %18, %20 : vector<4x128xf32>
    %c0_5 = arith.constant 0 : index
    %c0_6 = arith.constant 0 : index
    %22 = vector.load %arg4[%c0_5, %c0_6] : memref<4x128xf32, #tpu.memory_space<vmem>>, vector<4x128xf32>
    tpu.vector_store %arg4[%c0_5, %c0_6], %21 {strides = array<i32>} : memref<4x128xf32, #tpu.memory_space<vmem>>, vector<4x128xf32>,
    return
  }
  func.func @transform_0(%arg0: i32) -> (i32, i32) {
    %c0_i32 = arith.constant 0 : i32
    %c0_i32_0 = arith.constant 0 : i32
    return %c0_i32, %arg0 : i32, i32
  }
  func.func @transform_1(%arg0: i32) -> (i32, i32) {
    %c0_i32 = arith.constant 0 : i32
    %c0_i32_0 = arith.constant 0 : i32
    %c0_i32_1 = arith.constant 0 : i32
    return %c0_i32, %c0_i32_0 : i32, i32
  }
  func.func @transform_2(%arg0: i32) -> (i32, i32) {
    %c0_i32 = arith.constant 0 : i32
    %c0_i32_0 = arith.constant 0 : i32
    %c0_i32_1 = arith.constant 0 : i32
    return %c0_i32, %c0_i32_0 : i32, i32
  }
  func.func @transform_3(%arg0: i32) -> (i32, i32) {
    %c0_i32 = arith.constant 0 : i32
    %c0_i32_0 = arith.constant 0 : i32
    return %c0_i32, %arg0 : i32, i32
  }
}

</mosaic_0001>

<bundles_post_ra>
// kernel: testnet_forward.1
= control target key start
LH: loop header
LB: loop body
LE: loop exit
PB: predicated region body
PF: predicated region fallthrough
CT: control target
= control target key end

     0   :  { %v100_v1 = vmov 0   ;;  %v101_v2 = vmov 2   ;;  %s136_s0 = inlined_call_operand.vmem [shape: f32[3,8], index: 0, kind: input, shape index: {}]   ;;  %s137_s1 = inlined_call_operand.vmem [shape: f32[4,3], index: 1, kind: input, shape index: {}]   ;;  %s138_s2 = inlined_call_operand.vmem [shape: f32[4,1], index: 2, kind: input, shape index: {}]   ;;  %s139_s3 = inlined_call_operand.hbm [shape: f32[4,8], index: 3, kind: output, shape index: {}]  }
   0x1   :  { %v16_v0 = vld [vmem:[%s137_s1] sm:$0xf]  ;;  %73 = vset.pattern.permute.xlu0 %v100_v1  ;;  %75 = vset.pattern.permute.xlu1 %v101_v2 }
   0x2   :  { %8 = vsyncpa [#allocation3], 0  ;;  %19 = vperm.xlu0 %73, %v16_v0   ;;  %38 = vperm.xlu1 %75, %v16_v0   ;;  %v47_v3 = vld [vmem:[%s138_s2] sm:$0xf]  ;;  %v102_v4 = vmov 1   ;;  %v22_v5 = vlaneseq  ;;  %s103_s2 = smov [#allocation2]  }
   0x3   :  { %v15_v10 = vld [vmem:[%s136_s0] sm:$0x7]  ;;  %s61_s17 = sshll.u32 %s103_s2, 4  ;;  %s62_s17 = int_to_ptr.vmem [resolvable:$true] %s61_s17 }
   0x4   :  { %v23_v6 = vshrl.u32 %v22_v5, 7  ;;  %s78_s18 = scalar_lea.vmem %s62_s17, 64  ;;  %p83_p1 = scmp.lt.s32.totalorder %s62_s17, %s62_s17 }
   0x5   :  { %p79_p0 = scmp.ne.s32.totalorder %s62_s17, %s78_s18  ;;  %p84_p2 = scmp.lt.s32.totalorder %s78_s18, %s78_s18 }
   0x6   :  { %74 = vset.pattern.permute.xlu0 %v102_v4  ;;  %76 = vset.pattern.permute.xlu1 %v100_v1  ;;  %v24_v7 = vsub.s32 0, %v23_v6  ;;  %v33_v8 = vsub.s32 1, %v23_v6  ;;  %v43_v9 = vsub.s32 2, %v23_v6 }
   0x7   :  { %28 = vperm.xlu0 %74, %v16_v0   ;;  %50 = vperm.xlu1 %76, %v47_v3   ;;  %p85_p3 = por %p84_p2, %p83_p1 }
   0x8   :  { %v25_v12 = vrot.slane %v15_v10, %v24_v7  ;;  %v34_v13 = vrot.slane %v15_v10, %v33_v8  ;;  %v44_v14 = vrot.slane %v15_v10, %v43_v9 }
   0x9   :  { %p86_p4 = pnand %p85_p3, %p79_p0 }
   0xb   :  { %77 = vset.pattern.permute.xlu0 %v100_v1 }
  0x7d   :  { %v20_v11 = vpop.permute.xlu0 %19  ;;  %v39_v15 = vpop.permute.xlu1 %38 }
  0x7e   :  { %v26_v17 = vmul.f32 %v25_v12, %v20_v11  ;;  %v45_v19 = vmul.f32 %v44_v14, %v39_v15 }
  0x82   :  { %v29_v16 = vpop.permute.xlu0 %28  ;;  %v51_v21 = vpop.permute.xlu1 %50 }
  0x83   :  { %v35_v18 = vmul.f32 %v34_v13, %v29_v16 }
  0x85   :  { %v36_v20 = vadd.f32 %v35_v18, %v26_v17 }
  0x87   :  { %v46_v22 = vadd.f32 %v45_v19, %v36_v20 }
  0x89   :  { %v53_v23 = vadd.f32 %v51_v21, %v46_v22 }
  0x8b   :  { %54 = vst [vmem:[#allocation2] sm:$0xf] %v53_v23 }
  0x8c   :  { %89 = shalt.err (!%p86_p4)
}
  0x8d   :  { %64 = dma.vmem_to_hbm [thread:$0]  %s62_s17, 64, %s139_s3, [#allocation3]  }
  0x8e   :  { %98 = dma.done.wait [#allocation3], 64  }
  0x8f   :  { %99 = vsyncadd [#allocation3], 4294967232 }
  0x90   :  { %68 = vsyncpa [#allocation3], 1 }

</bundles_post_ra>
